<compile_context>
chip_gen: v7x
topology: tpu7x:2x2x1
jax: 0.10.0
libtpu: 0.0.40
codegen_flags: <defaults>
</compile_context>

<pallas_src>
import functools

import jax
import jax.numpy as jnp
from jax.experimental import pallas as pl
from jax.experimental.pallas import tpu as pltpu


def _downsample_a_kernel(x_ref, b_ref, o_ref, *, bt, g, c_in, c_pad, c_out, howo):
    """One program handles `bt` images.

    x_ref: (bt * c_in,  h*w)    -- one row per input channel plane (lane-dense)
    b_ref: (h*w, ho*wo)         -- pooling matrix (0.25 folded in), resident
    o_ref: (bt * c_out, ho*wo)  -- one row per output channel plane (lane-dense)
    """
    b = b_ref[...]

    # Zero channel padding written straight into the output block.
    if c_pad > 0:
        zpad = jnp.zeros((c_pad, howo), o_ref.dtype)
        for t in range(bt):
            ob = t * c_out
            o_ref[pl.ds(ob, c_pad), :] = zpad
            o_ref[pl.ds(ob + c_pad + c_in, c_pad), :] = zpad

    # Pool `g` images per MXU matmul (M = g*c_in) and store each image's rows
    # immediately so only one small pooled tile is live at a time.
    for t0 in range(0, bt, g):
        pooled = jnp.dot(x_ref[pl.ds(t0 * c_in, g * c_in), :], b,
                         preferred_element_type=jnp.float32)  # (g*c_in, ho*wo)
        for j in range(g):
            t = t0 + j
            o_ref[pl.ds(t * c_out + c_pad, c_in), :] = (
                pooled[j * c_in:(j + 1) * c_in, :].astype(o_ref.dtype))


def _round_up(v, m):
    return -(-v // m) * m


def downsample_a(x, *, target_block_bytes=4 << 20):
    """Pallas implementation of DownSampleA.forward for NCHW input."""
    n, c_in, h, w = x.shape
    assert h % 2 == 0 and w % 2 == 0, "avg_pool2d(2) needs even spatial dims"
    c_pad = c_in // 2
    c_out = c_in + 2 * c_pad
    ho, wo = h // 2, w // 2
    hw, howo = h * w, ho * wo

    itemsize = x.dtype.itemsize
    # Dtype-aware sublane tiling requirement (f32: 8, bf16: 16, int8/fp8: 32).
    sub = {4: 8, 2: 16, 1: 32}.get(itemsize, 32)

    # ---- images per block (bt): ~target_block_bytes of HBM traffic/step ----
    per_image_bytes = (c_in * hw + c_out * howo) * itemsize
    bt_cap = max(1, target_block_bytes // per_image_bytes)
    valid = [bt for bt in range(1, n + 1)
             if n % bt == 0
             and (bt == n
                  or ((bt * c_in) % sub == 0 and (bt * c_out) % sub == 0))]
    cand = [bt for bt in valid if bt <= bt_cap and n // bt >= 2]  # keep >=2 steps
    if not cand:
        cand = [bt for bt in valid if bt <= bt_cap]
    if not cand:
        cand = [min(valid)]
    bt = max(cand)

    # ---- images per matmul (g): healthy MXU M without huge live tiles ------
    gc = [d for d in range(1, bt + 1) if bt % d == 0 and d * c_in <= 256]
    g = max(gc) if gc else 1

    in_rows = bt * c_in
    out_rows = bt * c_out

    # Pair-sum pooling matrix (built once, outside the grid loop):
    #   b[k, o] = 0.25 iff flattened input position k lands in output cell o.
    src = jax.lax.broadcasted_iota(jnp.int32, (hw, howo), 0)
    dst = jax.lax.broadcasted_iota(jnp.int32, (hw, howo), 1)
    dst_of_src = (src // w // 2) * wo + (src % w) // 2
    b = jnp.where(dst_of_src == dst, 0.25, 0.0).astype(x.dtype)

    # Free, contiguous views: one row per channel plane.
    x2 = x.reshape(n * c_in, hw)

    kernel = functools.partial(_downsample_a_kernel, bt=bt, g=g, c_in=c_in,
                               c_pad=c_pad, c_out=c_out, howo=howo)

    # Explicit VMEM budget: double-buffered in/out blocks + pooling matrix +
    # the per-group pooled intermediate, tile-padded, with ~25% headroom.
    def tile_bytes(rows, cols, isz):
        return _round_up(rows, sub) * _round_up(cols, 128) * isz

    vmem_need = (2 * (tile_bytes(in_rows, hw, itemsize)
                      + tile_bytes(out_rows, howo, itemsize))
                 + 2 * tile_bytes(hw, howo, itemsize)
                 + tile_bytes(g * c_in, howo, 4))
    vmem_limit = min(max(int(1.25 * vmem_need) + (1 << 20), 4 << 20), 64 << 20)

    out2 = pl.pallas_call(
        kernel,
        out_shape=jax.ShapeDtypeStruct((n * c_out, howo), x.dtype),
        grid=(n // bt,),
        in_specs=[pl.BlockSpec((in_rows, hw), lambda i: (i, 0)),
                  pl.BlockSpec((hw, howo), lambda i: (0, 0))],   # resident
        out_specs=pl.BlockSpec((out_rows, howo), lambda i: (i, 0)),
        compiler_params=pltpu.CompilerParams(
            dimension_semantics=("parallel",),
            vmem_limit_bytes=vmem_limit),
    )(x2, b)

    return out2.reshape(n, c_out, ho, wo)


def _reference(x):
    n, c_in, h, w = x.shape
    c_pad = c_in // 2
    pool = x.reshape(n, c_in, h // 2, 2, w // 2, 2).mean(axis=(3, 5))
    return jnp.pad(pool, ((0, 0), (c_pad, c_pad), (0, 0), (0, 0)))


if __name__ == "__main__":
    key = jax.random.PRNGKey(0)
    k1, k2 = jax.random.split(key)

    # Small shape matching the module spec example.
    x = jax.random.normal(k1, (2, 4, 16, 16), dtype=jnp.float32)   # NCHW
    out = jax.block_until_ready(downsample_a(x))
    expected = _reference(x)
    assert out.shape == (2, 8, 8, 8), out.shape
    assert jnp.allclose(out, expected, atol=1e-5, rtol=1e-5), "mismatch (small)"

    # Larger CIFAR-style shape: exercises images_per_block > 1, grid >= 2,
    # grouped matmuls, and the lane-dense output path.
    x2 = jax.random.normal(k2, (8, 16, 32, 32), dtype=jnp.float32)
    out2 = jax.block_until_ready(downsample_a(x2))
    expected2 = _reference(x2)
    assert out2.shape == (8, 32, 16, 16), out2.shape
    assert jnp.allclose(out2, expected2, atol=1e-5, rtol=1e-5), "mismatch (large)"

    print("KERNEL_OK")
</pallas_src>

<mosaic_0001>
module attributes {stable_mosaic.version = 11 : i64} {
  func.func @_downsample_a_kernel(%arg0: i32, %arg1: memref<8x256xf32, #tpu.memory_space<vmem>>, %arg2: memref<256x64xf32, #tpu.memory_space<vmem>>, %arg3: memref<16x64xf32, #tpu.memory_space<vmem>>) attributes {dimension_semantics = [#tpu.dimension_semantics<parallel>], iteration_bounds = array<i64: 1>, scalar_prefetch = 0 : i64, scratch_operands = 0 : i64, tpu.core_type = #tpu.core_type<tc>, window_params = [{transform_indices = @transform_0, window_bounds = array<i64: 8, 256>}, {pipeline_mode = #tpu.pipeline_mode<synchronous>, transform_indices = @transform_1, window_bounds = array<i64: 256, 64>}, {transform_indices = @transform_2, window_bounds = array<i64: 16, 64>}]} {
    %c0 = arith.constant 0 : index
    %c0_0 = arith.constant 0 : index
    %0 = vector.load %arg2[%c0, %c0_0] : memref<256x64xf32, #tpu.memory_space<vmem>>, vector<256x64xf32>
    %cst = arith.constant 0.000000e+00 : f32
    %1 = vector.broadcast %cst : f32 to vector<2x64xf32>
    %c0_1 = arith.constant 0 : index
    %c0_2 = arith.constant 0 : index
    %2 = vector.load %arg3[%c0_1, %c0_2] : memref<16x64xf32, #tpu.memory_space<vmem>>, vector<2x64xf32>
    tpu.vector_store %arg3[%c0_1, %c0_2], %1 {strides = array<i32>} : memref<16x64xf32, #tpu.memory_space<vmem>>, vector<2x64xf32>,
    %c6 = arith.constant 6 : index
    %c0_3 = arith.constant 0 : index
    %3 = vector.load %arg3[%c6, %c0_3] : memref<16x64xf32, #tpu.memory_space<vmem>>, vector<2x64xf32>
    tpu.vector_store %arg3[%c6, %c0_3], %1 {strides = array<i32>} : memref<16x64xf32, #tpu.memory_space<vmem>>, vector<2x64xf32>,
    %c8 = arith.constant 8 : index
    %c0_4 = arith.constant 0 : index
    %4 = vector.load %arg3[%c8, %c0_4] : memref<16x64xf32, #tpu.memory_space<vmem>>, vector<2x64xf32>
    tpu.vector_store %arg3[%c8, %c0_4], %1 {strides = array<i32>} : memref<16x64xf32, #tpu.memory_space<vmem>>, vector<2x64xf32>,
    %c14 = arith.constant 14 : index
    %c0_5 = arith.constant 0 : index
    %5 = vector.load %arg3[%c14, %c0_5] : memref<16x64xf32, #tpu.memory_space<vmem>>, vector<2x64xf32>
    tpu.vector_store %arg3[%c14, %c0_5], %1 {strides = array<i32>} : memref<16x64xf32, #tpu.memory_space<vmem>>, vector<2x64xf32>,
    %c0_6 = arith.constant 0 : index
    %c0_7 = arith.constant 0 : index
    %6 = vector.load %arg1[%c0_6, %c0_7] : memref<8x256xf32, #tpu.memory_space<vmem>>, vector<8x256xf32>
    %cst_8 = arith.constant dense<0.000000e+00> : vector<8x64xf32>
    %7 = tpu.matmul %6, %0, %cst_8 {dimension_numbers = #tpu.dot_dimension_numbers<[1], [0], [0], [1], [0, 0, 1, 1], [], []>} : vector<8x256xf32>, vector<256x64xf32>, vector<8x64xf32> -> vector<8x64xf32>
    %8 = vector.extract_strided_slice %7 {offsets = [0, 0], sizes = [4, 64], strides = [1, 1]} : vector<8x64xf32> to vector<4x64xf32>
    %c2 = arith.constant 2 : index
    %c0_9 = arith.constant 0 : index
    %9 = vector.load %arg3[%c2, %c0_9] : memref<16x64xf32, #tpu.memory_space<vmem>>, vector<4x64xf32>
    tpu.vector_store %arg3[%c2, %c0_9], %8 {strides = array<i32>} : memref<16x64xf32, #tpu.memory_space<vmem>>, vector<4x64xf32>,
    %10 = vector.extract_strided_slice %7 {offsets = [4, 0], sizes = [4, 64], strides = [1, 1]} : vector<8x64xf32> to vector<4x64xf32>
    %c10 = arith.constant 10 : index
    %c0_10 = arith.constant 0 : index
    %11 = vector.load %arg3[%c10, %c0_10] : memref<16x64xf32, #tpu.memory_space<vmem>>, vector<4x64xf32>
    tpu.vector_store %arg3[%c10, %c0_10], %10 {strides = array<i32>} : memref<16x64xf32, #tpu.memory_space<vmem>>, vector<4x64xf32>,
    return
  }
  func.func @transform_0(%arg0: i32) -> (i32, i32) {
    %c0_i32 = arith.constant 0 : i32
    %c0_i32_0 = arith.constant 0 : i32
    return %arg0, %c0_i32 : i32, i32
  }
  func.func @transform_1(%arg0: i32) -> (i32, i32) {
    %c0_i32 = arith.constant 0 : i32
    %c0_i32_0 = arith.constant 0 : i32
    %c0_i32_1 = arith.constant 0 : i32
    return %c0_i32, %c0_i32_0 : i32, i32
  }
  func.func @transform_2(%arg0: i32) -> (i32, i32) {
    %c0_i32 = arith.constant 0 : i32
    %c0_i32_0 = arith.constant 0 : i32
    return %arg0, %c0_i32 : i32, i32
  }
}

</mosaic_0001>

<bundles_post_ra>
// kernel: tpu_custom_call.1
= control target key start
LH: loop header
LB: loop body
LE: loop exit
PB: predicated region body
PF: predicated region fallthrough
CT: control target
= control target key end

     0   :  { %s369_s0 = inlined_call_operand.vmem [shape: f32[8,256], index: 0, kind: input, shape index: {}]   ;;  %s370_s1 = inlined_call_operand.vmem [shape: f32[256,64], index: 1, kind: input, shape index: {}]   ;;  %s371_s2 = inlined_call_operand.hbm [shape: f32[16,64], index: 2, kind: output, shape index: {}]  }
   0x1   :  { %v28_v0 = vld [vmem:[%s370_s1 + $0x80] sm:$0xff]  ;;  %v29_v1 = vld [vmem:[%s370_s1 + $0x88] sm:$0xff]  ;;  %v30_v5 = vld [vmem:[%s370_s1 + $0x90] sm:$0xff] }
   0x2   :  { %v12_v2 = vld [vmem:[%s370_s1] sm:$0xff]  ;;  %v176_v3 = vpack.c.bf16 %v29_v1, %v28_v0  ;;  %v13_v4 = vld [vmem:[%s370_s1 + $0x8] sm:$0xff]  ;;  %v31_v6 = vld [vmem:[%s370_s1 + $0x98] sm:$0xff] }
   0x3   :  { %v178_v7 = vpack.c.bf16 %v13_v4, %v12_v2  ;;  %v180_v8 = vpack.c.bf16 %v31_v6, %v30_v5  ;;  %v14_v9 = vld [vmem:[%s370_s1 + $0x10] sm:$0xff]  ;;  %v15_v10 = vld [vmem:[%s370_s1 + $0x18] sm:$0xff]  ;;  %v32_v11 = vld [vmem:[%s370_s1 + $0xa0] sm:$0xff] }
   0x4   :  { %177 = vmatprep.subr.bf16.mxu0 %v176_v3  ;;  %v33_v12 = vld [vmem:[%s370_s1 + $0xa8] sm:$0xff]  ;;  %v182_v13 = vpack.c.bf16 %v15_v10, %v14_v9  ;;  %v16_v15 = vld [vmem:[%s370_s1 + $0x20] sm:$0xff]  ;;  %v34_v17 = vld [vmem:[%s370_s1 + $0xb0] sm:$0xff] }
   0x5   :  { %179 = vmatpush3.bf16.msra.mxu0 %v178_v7  ;;  %v184_v14 = vpack.c.bf16 %v33_v12, %v32_v11  ;;  %v17_v16 = vld [vmem:[%s370_s1 + $0x28] sm:$0xff]  ;;  %v35_v18 = vld [vmem:[%s370_s1 + $0xb8] sm:$0xff]  ;;  %v18_v21 = vld [vmem:[%s370_s1 + $0x30] sm:$0xff] }
   0x6   :  { %181 = vmatprep.subr.bf16.mxu0 %v180_v8  ;;  %v186_v19 = vpack.c.bf16 %v17_v16, %v16_v15  ;;  %v188_v20 = vpack.c.bf16 %v35_v18, %v34_v17  ;;  %v19_v22 = vld [vmem:[%s370_s1 + $0x38] sm:$0xff]  ;;  %v36_v23 = vld [vmem:[%s370_s1 + $0xc0] sm:$0xff]  ;;  %v37_v24 = vld [vmem:[%s370_s1 + $0xc8] sm:$0xff] }
   0x7   :  { %v50_v25 = vld [vmem:[%s369_s0 + $0x8] sm:$0xff] }
   0x8   :  { %115 = vmatprep.mubr.f32.mxu0 %v50_v25 }
   0x9   :  { %183 = vmatpush3.bf16.msra.mxu0 %v182_v13 }
   0xa   :  { %185 = vmatprep.subr.bf16.mxu0 %v184_v14 }
   0xb   :  { %7 = vsyncpa [#allocation3], 0  ;;  %v190_v26 = vpack.c.bf16 %v19_v22, %v18_v21  ;;  %v192_v27 = vpack.c.bf16 %v37_v24, %v36_v23  ;;  %v20_v28 = vld [vmem:[%s370_s1 + $0x40] sm:$0xff]  ;;  %v21_v29 = vld [vmem:[%s370_s1 + $0x48] sm:$0xff]  ;;  %vm44_vm0 = vcmask 517120   ;;  %v236_v50 = vmov 0.0  }
   0xc   :  { %v38_v30 = vld [vmem:[%s370_s1 + $0xd0] sm:$0xff]  ;;  %v39_v31 = vld [vmem:[%s370_s1 + $0xd8] sm:$0xff]  ;;  %v194_v32 = vpack.c.bf16 %v21_v29, %v20_v28  ;;  %v40_v36 = vld [vmem:[%s370_s1 + $0xe0] sm:$0xff]  ;;  %45 = vst.msk [vmem:[#allocation2] sm:$0x3] %vm44_vm0, %v236_v50  ;;  %s237_s21 = smov [#allocation2]  }
   0xd   :  { %187 = vmatpush3.bf16.msra.mxu0 %v186_v19  ;;  %v196_v33 = vpack.c.bf16 %v39_v31, %v38_v30  ;;  %v22_v34 = vld [vmem:[%s370_s1 + $0x50] sm:$0xff]  ;;  %v23_v35 = vld [vmem:[%s370_s1 + $0x58] sm:$0xff]  ;;  %v41_v37 = vld [vmem:[%s370_s1 + $0xe8] sm:$0xff]  ;;  %46 = vst.msk [vmem:[#allocation2 + $0x6] sm:$0x3] %vm44_vm0, %v236_v50  ;;  %s130_s22 = sshll.u32 %s237_s21, 4  ;;  %s131_s22 = int_to_ptr.vmem [resolvable:$true] %s130_s22 }
   0xe   :  { %189 = vmatprep.subr.bf16.mxu0 %v188_v20  ;;  %v198_v38 = vpack.c.bf16 %v23_v35, %v22_v34  ;;  %v200_v39 = vpack.c.bf16 %v41_v37, %v40_v36  ;;  %v24_v40 = vld [vmem:[%s370_s1 + $0x60] sm:$0xff]  ;;  %v25_v41 = vld [vmem:[%s370_s1 + $0x68] sm:$0xff]  ;;  %v42_v42 = vld [vmem:[%s370_s1 + $0xf0] sm:$0xff]  ;;  %47 = vst.msk [vmem:[#allocation2 + $0x8] sm:$0x3] %vm44_vm0, %v236_v50  ;;  %vm121_vm1 = vcmask 519168   ;;  %p217_p1 = scmp.lt.s32.totalorder %s131_s22, %s131_s22 }
   0xf   :  { %v43_v43 = vld [vmem:[%s370_s1 + $0xf8] sm:$0xff]  ;;  %v202_v44 = vpack.c.bf16 %v25_v41, %v24_v40  ;;  %v26_v46 = vld [vmem:[%s370_s1 + $0x70] sm:$0xff]  ;;  %v49_v49 = vld [vmem:[%s369_s0] sm:$0xff]  ;;  %48 = vst.msk [vmem:[#allocation2 + $0xe] sm:$0x3] %vm44_vm0, %v236_v50  ;;  %vm123_vm2 = vcmask 523268  }
  0x10   :  { %v204_v45 = vpack.c.bf16 %v43_v43, %v42_v42  ;;  %v27_v47 = vld [vmem:[%s370_s1 + $0x78] sm:$0xff]  ;;  %s212_s1 = scalar_lea.vmem %s131_s22, 256 }
  0x11   :  { %191 = vmatpush3.bf16.msra.mxu0 %v190_v26  ;;  %v206_v48 = vpack.c.bf16 %v27_v47, %v26_v46  ;;  %p213_p0 = scmp.ne.s32.totalorder %s131_s22, %s212_s1  ;;  %p218_p2 = scmp.lt.s32.totalorder %s212_s1, %s212_s1 }
  0x12   :  { %193 = vmatprep.subr.bf16.mxu0 %v192_v27 }
  0x13   :  { %p219_p3 = por %p218_p2, %p217_p1 }
  0x15   :  { %195 = vmatpush3.bf16.msra.mxu0 %v194_v32  ;;  %p220_p4 = pnand %p219_p3, %p213_p0 }
  0x16   :  { %197 = vmatprep.subr.bf16.mxu0 %v196_v33 }
  0x19   :  { %199 = vmatpush3.bf16.msra.mxu0 %v198_v38 }
  0x1a   :  { %201 = vmatprep.subr.bf16.mxu0 %v200_v39 }
  0x1d   :  { %203 = vmatpush3.bf16.msra.mxu0 %v202_v44 }
  0x1e   :  { %205 = vmatprep.subr.bf16.mxu0 %v204_v45 }
  0x21   :  { %207 = vmatpush3.bf16.msra.mxu0 %v206_v48 }
  0x24   :  { %116 = vmatmul.mubr.f32.vlgmr.msra.gmra.mrb[0].mxu0 %v49_v49 }
  0xf7   :  { %v173_v51 = vpop.f32.mrb[0].mxu0 }
  0xf8   :  { %v174_v52 = vpop.f32.mrb[1].mxu0 }
  0xf9   :  { %v175_v53 = vadd.f32 %v174_v52, %v173_v51 }
  0xfb   :  { %122 = vst.msk [vmem:[#allocation2 + $0x2] sm:$0xf] %vm121_vm1, %v175_v53 }
  0xfc   :  { %124 = vst.msk [vmem:[#allocation2 + $0x6] sm:$0xf0] %vm123_vm2, %v175_v53 }
  0xfd   :  { %223 = shalt.err (!%p220_p4)
}
  0xfe   :  { %s224_s24 = scalar_lea.hbm %s371_s2, 256 }
  0xff   :  { %p225_p5 = scmp.ne.s32.totalorder %s371_s2, %s224_s24  ;;  %p228_p6 = scmp.lt.u32.totalorder %s224_s24, %s371_s2 }
 0x101   :  { %p230_p7 = pnand %p228_p6, %p225_p5 }
 0x103   :  { %233 = shalt.err (!%p230_p7)
}
 0x104   :  { %s238_s29 = smov 128   ;;  %s239_s30 = smov 8  }
 0x105   :  { %136 = dma.vmem_to_hbm [thread:$0]  %s131_s22, 256, %s371_s2, [#allocation3], %s238_s29, %s238_s29, %s239_s30  }
 0x106   :  { %234 = dma.done.wait [#allocation3], 256  }
 0x107   :  { %235 = vsyncadd [#allocation3], 4294967040 }
 0x108   :  { %140 = vsyncpa [#allocation3], 1 }

</bundles_post_ra>
